<compile_context>
chip_gen: v7x
topology: tpu7x:2x2x1
jax: 0.10.0
libtpu: 0.0.40
codegen_flags: <defaults>
</compile_context>

<pallas_src>
import functools
import math

import jax
import jax.numpy as jnp
import numpy as np
from jax.experimental import pallas as pl
from jax.experimental.pallas import tpu as pltpu


def cross_attn_kernel(q_ref, m_ref, bias_ref, qw_ref, kw_ref, vw_ref,
                      ow_ref, ob_ref, o_ref, *, num_head, key_dim):
    """One batch element per grid step: all heads handled as a batched dot."""
    scale = 1.0 / math.sqrt(key_dim)
    f32 = jnp.float32
    bf16 = jnp.bfloat16

    q = q_ref[0]                            # (S, HS)  bf16
    m = m_ref[0]                            # (K, HS)  bf16
    bias = bias_ref[0].astype(f32)          # (N, S, K) f32 -- cast once

    S, HS = q.shape
    K = m.shape[0]

    # Broadcast activations across the head axis so every matmul below is a
    # canonical head-batched dot_general (same FLOPs as the flat projection,
    # no in-kernel lane slicing / relayout).
    q_b = jnp.broadcast_to(q[None, :, :], (num_head, S, HS))   # (N, S, HS) bf16
    m_b = jnp.broadcast_to(m[None, :, :], (num_head, K, HS))   # (N, K, HS) bf16

    # Projections: bf16 on the MXU, f32 accumulation.
    qp = jnp.einsum('nsh,nhc->nsc', q_b, qw_ref[...],
                    preferred_element_type=f32)                # (N, S, C)
    kp = jnp.einsum('nkh,nhc->nkc', m_b, kw_ref[...],
                    preferred_element_type=f32)                # (N, K, C)
    vp = jnp.einsum('nkh,nhc->nkc', m_b, vw_ref[...],
                    preferred_element_type=f32)                # (N, K, C)

    qp = (qp * scale).astype(bf16)
    kp = kp.astype(bf16)
    vp = vp.astype(bf16)

    # Head-batched attention logits + bias (f32 for softmax).
    logits = jnp.einsum('nsc,nkc->nsk', qp, kp,
                        preferred_element_type=f32) + bias     # (N, S, K)

    # Numerically stable softmax over K; normalize via EUP approx reciprocal.
    logits = logits - jnp.max(logits, axis=-1, keepdims=True)
    p = jnp.exp(logits)
    denom = jnp.sum(p, axis=-1, keepdims=True)
    p = (p * pl.reciprocal(denom, approx=True)).astype(bf16)

    # Weighted values, head-batched.
    wo = jnp.einsum('nsk,nkc->nsc', p, vp,
                    preferred_element_type=f32).astype(bf16)   # (N, S, C)

    # Output projection per head, then reduce over heads (plain vreg adds).
    out_h = jnp.einsum('nsc,nch->nsh', wo, ow_ref[...],
                       preferred_element_type=f32)             # (N, S, HS)
    out = jnp.sum(out_h, axis=0) + ob_ref[...].astype(f32)     # (S, HS)

    o_ref[0] = out.astype(o_ref.dtype)


def cross_attention(q_data, m_data, batched_bias, q_w, k_w, v_w, o_w, o_b):
    B, S, HS = q_data.shape
    _, K, _ = m_data.shape
    Nh = batched_bias.shape[1]
    C = HS // Nh

    # Pre-arrange weights head-major in the wrapper (plain XLA, one-time) so
    # the kernel's matmuls are head-batched with no in-kernel slicing/concat.
    qw_r = q_w.reshape(HS, Nh, C).transpose(1, 0, 2)   # (N, HS, C)
    kw_r = k_w.reshape(HS, Nh, C).transpose(1, 0, 2)   # (N, HS, C)
    vw_r = v_w.reshape(HS, Nh, C).transpose(1, 0, 2)   # (N, HS, C)
    ow_r = o_w.reshape(Nh, C, HS)                      # (N, C, HS)

    kernel = functools.partial(cross_attn_kernel, num_head=Nh, key_dim=C)

    return pl.pallas_call(
        kernel,
        out_shape=jax.ShapeDtypeStruct((B, S, HS), q_data.dtype),
        grid_spec=pl.GridSpec(
            grid=(B,),
            in_specs=[
                pl.BlockSpec((1, S, HS), lambda b: (b, 0, 0)),
                pl.BlockSpec((1, K, HS), lambda b: (b, 0, 0)),
                pl.BlockSpec((1, Nh, S, K), lambda b: (b, 0, 0, 0)),
                # Weight blocks have a constant index map -> not re-DMA'd
                # across consecutive grid steps.
                pl.BlockSpec((Nh, HS, C), lambda b: (0, 0, 0)),
                pl.BlockSpec((Nh, HS, C), lambda b: (0, 0, 0)),
                pl.BlockSpec((Nh, HS, C), lambda b: (0, 0, 0)),
                pl.BlockSpec((Nh, C, HS), lambda b: (0, 0, 0)),
                pl.BlockSpec((1, HS), lambda b: (0, 0)),
            ],
            out_specs=pl.BlockSpec((1, S, HS), lambda b: (b, 0, 0)),
        ),
        compiler_params=pltpu.CompilerParams(
            dimension_semantics=("parallel",)),
    )(q_data, m_data, batched_bias, qw_r, kw_r, vw_r, ow_r, o_b)


def reference(q_data, m_data, bias, q_w, k_w, v_w, o_w, o_b):
    """Pure-JAX f32 reference with identical semantics."""
    B, S, HS = q_data.shape
    Nh = bias.shape[1]
    C = HS // Nh
    f32 = jnp.float32
    q = jnp.einsum('bsa,anc->bsnc', q_data.astype(f32),
                   q_w.astype(f32).reshape(HS, Nh, C)) * (1.0 / math.sqrt(C))
    k = jnp.einsum('bka,anc->bknc', m_data.astype(f32),
                   k_w.astype(f32).reshape(HS, Nh, C))
    v = jnp.einsum('bka,anc->bknc', m_data.astype(f32),
                   v_w.astype(f32).reshape(HS, Nh, C))
    logits = jnp.einsum('bsnc,bknc->bnsk', q, k) + bias.astype(f32)
    w = jax.nn.softmax(logits, axis=-1)
    wa = jnp.einsum('bnsk,bknc->bsnc', w, v).reshape(B, S, Nh * C)
    out = jnp.einsum('bsd,do->bso', wa, o_w.astype(f32)) + o_b.astype(f32)
    return out


if __name__ == "__main__":
    # Small deterministic shapes consistent with the module:
    #   N = 5 heads, HS divisible by N.
    B, N, S, K, HS = 2, 5, 8, 16, 40
    C = HS // N

    key = jax.random.PRNGKey(0)
    k1, k2, k3, k4, k5, k6, k7, k8 = jax.random.split(key, 8)

    q_data = jax.random.normal(k1, (B, S, HS), dtype=jnp.float32).astype(jnp.bfloat16)
    m_data = jax.random.normal(k2, (B, K, HS), dtype=jnp.float32).astype(jnp.bfloat16)
    batched_bias = jax.random.normal(k3, (B, N, S, K), dtype=jnp.float32).astype(jnp.bfloat16)

    # Deterministic synthetic parameters (shapes follow CrossAttention:
    # per-head projection weights flattened to 2-D, split head-major in the
    # wrapper).
    q_w = (jax.random.normal(k4, (HS, N * C), dtype=jnp.float32) / math.sqrt(HS)).astype(jnp.bfloat16)
    k_w = (jax.random.normal(k5, (HS, N * C), dtype=jnp.float32) / math.sqrt(HS)).astype(jnp.bfloat16)
    v_w = (jax.random.normal(k6, (HS, N * C), dtype=jnp.float32) / math.sqrt(HS)).astype(jnp.bfloat16)
    o_w = (jax.random.normal(k7, (N * C, HS), dtype=jnp.float32) / math.sqrt(N * C)).astype(jnp.bfloat16)
    o_b = (0.01 * jax.random.normal(k8, (1, HS), dtype=jnp.float32)).astype(jnp.bfloat16)

    out = cross_attention(q_data, m_data, batched_bias, q_w, k_w, v_w, o_w, o_b)
    out = jax.block_until_ready(out)

    ref = reference(q_data, m_data, batched_bias, q_w, k_w, v_w, o_w, o_b)
    np.testing.assert_allclose(np.asarray(out, dtype=np.float32),
                               np.asarray(ref, dtype=np.float32),
                               rtol=5e-2, atol=5e-2)

    assert out.shape == (B, S, HS) and out.dtype == jnp.bfloat16
    print("KERNEL_OK")
</pallas_src>

<mosaic_0001>
module attributes {stable_mosaic.version = 11 : i64} {
  func.func @cross_attn_kernel(%arg0: i32, %arg1: memref<1x8x40xbf16, #tpu.memory_space<vmem>>, %arg2: memref<1x16x40xbf16, #tpu.memory_space<vmem>>, %arg3: memref<1x5x8x16xbf16, #tpu.memory_space<vmem>>, %arg4: memref<5x40x8xbf16, #tpu.memory_space<vmem>>, %arg5: memref<5x40x8xbf16, #tpu.memory_space<vmem>>, %arg6: memref<5x40x8xbf16, #tpu.memory_space<vmem>>, %arg7: memref<5x8x40xbf16, #tpu.memory_space<vmem>>, %arg8: memref<1x40xbf16, #tpu.memory_space<vmem>>, %arg9: memref<1x8x40xbf16, #tpu.memory_space<vmem>>) attributes {dimension_semantics = [#tpu.dimension_semantics<parallel>], iteration_bounds = array<i64: 2>, scalar_prefetch = 0 : i64, scratch_operands = 0 : i64, tpu.core_type = #tpu.core_type<tc>, window_params = [{transform_indices = @transform_0, window_bounds = array<i64: 1, 8, 40>}, {transform_indices = @transform_1, window_bounds = array<i64: 1, 16, 40>}, {transform_indices = @transform_2, window_bounds = array<i64: 1, 5, 8, 16>}, {pipeline_mode = #tpu.pipeline_mode<synchronous>, transform_indices = @transform_3, window_bounds = array<i64: 5, 40, 8>}, {pipeline_mode = #tpu.pipeline_mode<synchronous>, transform_indices = @transform_4, window_bounds = array<i64: 5, 40, 8>}, {pipeline_mode = #tpu.pipeline_mode<synchronous>, transform_indices = @transform_5, window_bounds = array<i64: 5, 40, 8>}, {pipeline_mode = #tpu.pipeline_mode<synchronous>, transform_indices = @transform_6, window_bounds = array<i64: 5, 8, 40>}, {pipeline_mode = #tpu.pipeline_mode<synchronous>, transform_indices = @transform_7, window_bounds = array<i64: 1, 40>}, {transform_indices = @transform_8, window_bounds = array<i64: 1, 8, 40>}]} {
    %c0 = arith.constant 0 : index
    %c0_0 = arith.constant 0 : index
    %c0_1 = arith.constant 0 : index
    %0 = vector.load %arg1[%c0, %c0_0, %c0_1] : memref<1x8x40xbf16, #tpu.memory_space<vmem>>, vector<1x8x40xbf16>
    %1 = vector.shape_cast %0 : vector<1x8x40xbf16> to vector<8x40xbf16>
    %c0_2 = arith.constant 0 : index
    %c0_3 = arith.constant 0 : index
    %c0_4 = arith.constant 0 : index
    %2 = vector.load %arg2[%c0_2, %c0_3, %c0_4] : memref<1x16x40xbf16, #tpu.memory_space<vmem>>, vector<1x16x40xbf16>
    %3 = vector.shape_cast %2 : vector<1x16x40xbf16> to vector<16x40xbf16>
    %c0_5 = arith.constant 0 : index
    %c0_6 = arith.constant 0 : index
    %c0_7 = arith.constant 0 : index
    %c0_8 = arith.constant 0 : index
    %4 = vector.load %arg3[%c0_5, %c0_6, %c0_7, %c0_8] : memref<1x5x8x16xbf16, #tpu.memory_space<vmem>>, vector<1x5x8x16xbf16>
    %5 = vector.shape_cast %4 : vector<1x5x8x16xbf16> to vector<5x8x16xbf16>
    %6 = arith.extf %5 : vector<5x8x16xbf16> to vector<5x8x16xf32>
    %7 = vector.shape_cast %1 : vector<8x40xbf16> to vector<1x8x40xbf16>
    %8 = vector.shape_cast %7 : vector<1x8x40xbf16> to vector<1x8x40xbf16>
    %9 = vector.broadcast %8 : vector<1x8x40xbf16> to vector<5x8x40xbf16>
    %10 = vector.shape_cast %3 : vector<16x40xbf16> to vector<1x16x40xbf16>
    %11 = vector.shape_cast %10 : vector<1x16x40xbf16> to vector<1x16x40xbf16>
    %12 = vector.broadcast %11 : vector<1x16x40xbf16> to vector<5x16x40xbf16>
    %c0_9 = arith.constant 0 : index
    %c0_10 = arith.constant 0 : index
    %c0_11 = arith.constant 0 : index
    %13 = vector.load %arg4[%c0_9, %c0_10, %c0_11] : memref<5x40x8xbf16, #tpu.memory_space<vmem>>, vector<5x40x8xbf16>
    "tpu.trace_start"() <{level = 10 : i32, message = "nsh,nhc->nsc"}> : () -> ()
    %cst = arith.constant dense<0.000000e+00> : vector<5x8x8xf32>
    %14 = tpu.matmul %9, %13, %cst {dimension_numbers = #tpu.dot_dimension_numbers<[2], [1], [1], [2], [0, 0, 0, 1, 1, 2], [0], [0]>} : vector<5x8x40xbf16>, vector<5x40x8xbf16>, vector<5x8x8xf32> -> vector<5x8x8xf32>
    "tpu.trace_stop"() : () -> ()
    %c0_12 = arith.constant 0 : index
    %c0_13 = arith.constant 0 : index
    %c0_14 = arith.constant 0 : index
    %15 = vector.load %arg5[%c0_12, %c0_13, %c0_14] : memref<5x40x8xbf16, #tpu.memory_space<vmem>>, vector<5x40x8xbf16>
    "tpu.trace_start"() <{level = 10 : i32, message = "nkh,nhc->nkc"}> : () -> ()
    %cst_15 = arith.constant dense<0.000000e+00> : vector<5x16x8xf32>
    %16 = tpu.matmul %12, %15, %cst_15 {dimension_numbers = #tpu.dot_dimension_numbers<[2], [1], [1], [2], [0, 0, 0, 1, 1, 2], [0], [0]>} : vector<5x16x40xbf16>, vector<5x40x8xbf16>, vector<5x16x8xf32> -> vector<5x16x8xf32>
    "tpu.trace_stop"() : () -> ()
    %c0_16 = arith.constant 0 : index
    %c0_17 = arith.constant 0 : index
    %c0_18 = arith.constant 0 : index
    %17 = vector.load %arg6[%c0_16, %c0_17, %c0_18] : memref<5x40x8xbf16, #tpu.memory_space<vmem>>, vector<5x40x8xbf16>
    "tpu.trace_start"() <{level = 10 : i32, message = "nkh,nhc->nkc"}> : () -> ()
    %cst_19 = arith.constant dense<0.000000e+00> : vector<5x16x8xf32>
    %18 = tpu.matmul %12, %17, %cst_19 {dimension_numbers = #tpu.dot_dimension_numbers<[2], [1], [1], [2], [0, 0, 0, 1, 1, 2], [0], [0]>} : vector<5x16x40xbf16>, vector<5x40x8xbf16>, vector<5x16x8xf32> -> vector<5x16x8xf32>
    "tpu.trace_stop"() : () -> ()
    %cst_20 = arith.constant 0.353553385 : f32
    %19 = vector.broadcast %cst_20 : f32 to vector<5x8x8xf32>
    %20 = arith.mulf %14, %19 : vector<5x8x8xf32>
    %21 = arith.truncf %20 : vector<5x8x8xf32> to vector<5x8x8xbf16>
    %22 = arith.truncf %16 : vector<5x16x8xf32> to vector<5x16x8xbf16>
    %23 = arith.truncf %18 : vector<5x16x8xf32> to vector<5x16x8xbf16>
    "tpu.trace_start"() <{level = 10 : i32, message = "nsc,nkc->nsk"}> : () -> ()
    %cst_21 = arith.constant dense<0.000000e+00> : vector<5x8x16xf32>
    %24 = tpu.matmul %21, %22, %cst_21 {dimension_numbers = #tpu.dot_dimension_numbers<[2], [2], [1], [1], [0, 0, 0, 1, 1, 1], [0], [0]>} : vector<5x8x8xbf16>, vector<5x16x8xbf16>, vector<5x8x16xf32> -> vector<5x8x16xf32>
    "tpu.trace_stop"() : () -> ()
    %25 = arith.addf %24, %6 : vector<5x8x16xf32>
    %cst_22 = arith.constant dense<0xFF800000> : vector<5x8xf32>
    %26 = vector.multi_reduction <maximumf>, %25, %cst_22 [2] : vector<5x8x16xf32> to vector<5x8xf32>
    %27 = vector.shape_cast %26 : vector<5x8xf32> to vector<5x8x1xf32>
    %28 = vector.broadcast %27 : vector<5x8x1xf32> to vector<5x8x16xf32>
    %29 = arith.subf %25, %28 : vector<5x8x16xf32>
    %30 = math.exp %29 : vector<5x8x16xf32>
    %cst_23 = arith.constant dense<0.000000e+00> : vector<5x8xf32>
    %31 = vector.multi_reduction <add>, %30, %cst_23 [2] : vector<5x8x16xf32> to vector<5x8xf32>
    %32 = vector.shape_cast %31 : vector<5x8xf32> to vector<5x8x1xf32>
    %33 = tpu.reciprocal %32 {approx = true} : vector<5x8x1xf32> -> vector<5x8x1xf32>
    %34 = vector.broadcast %33 : vector<5x8x1xf32> to vector<5x8x16xf32>
    %35 = arith.mulf %30, %34 : vector<5x8x16xf32>
    %36 = arith.truncf %35 : vector<5x8x16xf32> to vector<5x8x16xbf16>
    "tpu.trace_start"() <{level = 10 : i32, message = "nsk,nkc->nsc"}> : () -> ()
    %cst_24 = arith.constant dense<0.000000e+00> : vector<5x8x8xf32>
    %37 = tpu.matmul %36, %23, %cst_24 {dimension_numbers = #tpu.dot_dimension_numbers<[2], [1], [1], [2], [0, 0, 0, 1, 1, 2], [0], [0]>} : vector<5x8x16xbf16>, vector<5x16x8xbf16>, vector<5x8x8xf32> -> vector<5x8x8xf32>
    "tpu.trace_stop"() : () -> ()
    %38 = arith.truncf %37 : vector<5x8x8xf32> to vector<5x8x8xbf16>
    %c0_25 = arith.constant 0 : index
    %c0_26 = arith.constant 0 : index
    %c0_27 = arith.constant 0 : index
    %39 = vector.load %arg7[%c0_25, %c0_26, %c0_27] : memref<5x8x40xbf16, #tpu.memory_space<vmem>>, vector<5x8x40xbf16>
    "tpu.trace_start"() <{level = 10 : i32, message = "nsc,nch->nsh"}> : () -> ()
    %cst_28 = arith.constant dense<0.000000e+00> : vector<5x8x40xf32>
    %40 = tpu.matmul %38, %39, %cst_28 {dimension_numbers = #tpu.dot_dimension_numbers<[2], [1], [1], [2], [0, 0, 0, 1, 1, 2], [0], [0]>} : vector<5x8x8xbf16>, vector<5x8x40xbf16>, vector<5x8x40xf32> -> vector<5x8x40xf32>
    "tpu.trace_stop"() : () -> ()
    %cst_29 = arith.constant dense<0.000000e+00> : vector<8x40xf32>
    %41 = vector.multi_reduction <add>, %40, %cst_29 [0] : vector<5x8x40xf32> to vector<8x40xf32>
    %c0_30 = arith.constant 0 : index
    %c0_31 = arith.constant 0 : index
    %42 = vector.load %arg8[%c0_30, %c0_31] : memref<1x40xbf16, #tpu.memory_space<vmem>>, vector<1x40xbf16>
    %43 = arith.extf %42 : vector<1x40xbf16> to vector<1x40xf32>
    %44 = vector.broadcast %43 : vector<1x40xf32> to vector<8x40xf32>
    %45 = arith.addf %41, %44 : vector<8x40xf32>
    %46 = arith.truncf %45 : vector<8x40xf32> to vector<8x40xbf16>
    %c0_32 = arith.constant 0 : index
    %c0_33 = arith.constant 0 : index
    %c0_34 = arith.constant 0 : index
    %47 = vector.load %arg9[%c0_32, %c0_33, %c0_34] : memref<1x8x40xbf16, #tpu.memory_space<vmem>>, vector<1x8x40xbf16>
    %48 = vector.shape_cast %47 : vector<1x8x40xbf16> to vector<8x40xbf16>
    %49 = vector.shape_cast %46 : vector<8x40xbf16> to vector<1x8x40xbf16>
    tpu.vector_store %arg9[%c0_32, %c0_33, %c0_34], %49 {strides = array<i32>} : memref<1x8x40xbf16, #tpu.memory_space<vmem>>, vector<1x8x40xbf16>,
    return
  }
  func.func @transform_0(%arg0: i32) -> (i32, i32, i32) {
    %c0_i32 = arith.constant 0 : i32
    %c0_i32_0 = arith.constant 0 : i32
    %c0_i32_1 = arith.constant 0 : i32
    return %arg0, %c0_i32, %c0_i32_0 : i32, i32, i32
  }
  func.func @transform_1(%arg0: i32) -> (i32, i32, i32) {
    %c0_i32 = arith.constant 0 : i32
    %c0_i32_0 = arith.constant 0 : i32
    %c0_i32_1 = arith.constant 0 : i32
    return %arg0, %c0_i32, %c0_i32_0 : i32, i32, i32
  }
  func.func @transform_2(%arg0: i32) -> (i32, i32, i32, i32) {
    %c0_i32 = arith.constant 0 : i32
    %c0_i32_0 = arith.constant 0 : i32
    %c0_i32_1 = arith.constant 0 : i32
    %c0_i32_2 = arith.constant 0 : i32
    return %arg0, %c0_i32, %c0_i32_0, %c0_i32_1 : i32, i32, i32, i32
  }
  func.func @transform_3(%arg0: i32) -> (i32, i32, i32) {
    %c0_i32 = arith.constant 0 : i32
    %c0_i32_0 = arith.constant 0 : i32
    %c0_i32_1 = arith.constant 0 : i32
    %c0_i32_2 = arith.constant 0 : i32
    return %c0_i32, %c0_i32_0, %c0_i32_1 : i32, i32, i32
  }
  func.func @transform_4(%arg0: i32) -> (i32, i32, i32) {
    %c0_i32 = arith.constant 0 : i32
    %c0_i32_0 = arith.constant 0 : i32
    %c0_i32_1 = arith.constant 0 : i32
    %c0_i32_2 = arith.constant 0 : i32
    return %c0_i32, %c0_i32_0, %c0_i32_1 : i32, i32, i32
  }
  func.func @transform_5(%arg0: i32) -> (i32, i32, i32) {
    %c0_i32 = arith.constant 0 : i32
    %c0_i32_0 = arith.constant 0 : i32
    %c0_i32_1 = arith.constant 0 : i32
    %c0_i32_2 = arith.constant 0 : i32
    return %c0_i32, %c0_i32_0, %c0_i32_1 : i32, i32, i32
  }
  func.func @transform_6(%arg0: i32) -> (i32, i32, i32) {
    %c0_i32 = arith.constant 0 : i32
    %c0_i32_0 = arith.constant 0 : i32
    %c0_i32_1 = arith.constant 0 : i32
    %c0_i32_2 = arith.constant 0 : i32
    return %c0_i32, %c0_i32_0, %c0_i32_1 : i32, i32, i32
  }
  func.func @transform_7(%arg0: i32) -> (i32, i32) {
    %c0_i32 = arith.constant 0 : i32
    %c0_i32_0 = arith.constant 0 : i32
    %c0_i32_1 = arith.constant 0 : i32
    return %c0_i32, %c0_i32_0 : i32, i32
  }
  func.func @transform_8(%arg0: i32) -> (i32, i32, i32) {
    %c0_i32 = arith.constant 0 : i32
    %c0_i32_0 = arith.constant 0 : i32
    %c0_i32_1 = arith.constant 0 : i32
    return %arg0, %c0_i32, %c0_i32_0 : i32, i32, i32
  }
}

</mosaic_0001>

<bundles_post_ra>
// kernel: tpu_custom_call.1
= control target key start
LH: loop header
LB: loop body
LE: loop exit
PB: predicated region body
PF: predicated region fallthrough
CT: control target
= control target key end

     0   :  { %13 = vsyncpa [#allocation3], 0  ;;  %s3351_s0 = inlined_call_operand.vmem [shape: bf16[2,8,40], index: 0, kind: input, shape index: {}]   ;;  %s3352_s1 = inlined_call_operand.vmem [shape: bf16[2,16,40], index: 1, kind: input, shape index: {}]   ;;  %s3353_s2 = inlined_call_operand.vmem [shape: bf16[2,5,8,16], index: 2, kind: input, shape index: {}]   ;;  %s3354_s3 = inlined_call_operand.vmem [shape: bf16[5,40,8], index: 3, kind: input, shape index: {}]   ;;  %s3355_s4 = inlined_call_operand.vmem [shape: bf16[5,40,8], index: 4, kind: input, shape index: {}]   ;;  %s3356_s5 = inlined_call_operand.vmem [shape: bf16[5,40,8], index: 5, kind: input, shape index: {}]   ;;  %s3357_s6 = inlined_call_operand.vmem [shape: bf16[5,8,40], index: 6, kind: input, shape index: {}]   ;;  %s3358_s7 = inlined_call_operand.vmem [shape: bf16[1,40], index: 7, kind: input, shape index: {}]   ;;  %s3359_s8 = inlined_call_operand.hbm [shape: bf16[2,8,40], index: 8, kind: output, shape index: {}]  }
   0x1   :  { %15 = vsyncpa [#allocation3 + $0x1], 0  ;;  %s2855_s27 = smov 0   ;;  %s2857_s28 = smov 0  }
   0x2   :  { %s2859_s29 = smov 0   ;;  %s2861_s30 = smov 0  }
   0x3 LB: > { %s2876_s9 = sadd.s32 4294967295, %s2805_s30   ;;  %s2206_s10 = sadd.s32 4294967294, %s2805_s30   ;;  %s2805_s30 = sphi %s2861_s30, %s3365_s30   ;;  %s2801_s29 = sphi %s2859_s29, %s3364_s29   ;;  %s2797_s28 = sphi %s2857_s28, %s3363_s28   ;;  %s2793_s27 = sphi %s2855_s27, %s3362_s27  }
   0x4   : > { %s2880_s11 = sadd.s32 1, %s2805_s30   ;;  %s211_s12 = sadd.s32 1, %s2801_s29 }
   0x5   : > { %s208_s13 = ssub.s32 %s2805_s30, %s2880_s11  ;;  %p221_p0 = scmp.ne.s32.totalorder %s2801_s29, %s2797_s28 }
   0x6   : > { %p209_p1 = scmp.eq.s32.totalorder %s208_s13, 0  ;;  %p222_p2 = scmp.eq.s32.totalorder %s2876_s9, 1 }
   0x7   : > { %p227_p3 = scmp.ne.s32.totalorder %s2797_s28, %s2793_s27  ;;  %p228_p4 = scmp.eq.s32.totalorder %s2206_s10, 1 }
   0x8   : > { %s2891_s14 = scalar_select %p209_p1, %s2801_s29, %s211_s12  }
   0x9   : > { %p2893_p5 = por %p222_p2, %p221_p0  ;;  %p2897_p6 = por %p228_p4, %p227_p3 }
   0xa   : > { %p2209_p7 = scmp.ge.s32.totalorder %s2805_s30, 1  ;;  %p284_p8 = scmp.lt.s32.totalorder %s2805_s30, 3 }
   0xc   : > { %p285_p9 = pnand %p2209_p7, %p284_p8 }
   0xd   : > { %v2677_v0 = vld [vmem:[%s3354_s3] sm:$0xff] (!%p285_p9)   ;;  %v2807_v1 = vmov (!%p285_p9), 0.0   ;;  %v2678_v2 = vld [vmem:[%s3354_s3 + $0x14] sm:$0xff] (!%p285_p9)   ;;  %vm399_vm0 = vcmask (!%p285_p9), 1043456   ;;  %v2679_v3 = vld [vmem:[%s3354_s3 + $0x8] sm:$0xff] (!%p285_p9)   ;;  %p327_p10 = scmp.lt.s32.totalorder (!%p285_p9), %s2876_s9, 1 }
   0xe   : > { %288 = sbr.rel (%p285_p9) target bundleno = 1277 (0x4fd), region = 52  ;;  %2395 = vmatprep.subr.bf16.mxu0 (!%p285_p9), %v2807_v1  ;;  %2405 = vmatprep.subr.bf16.mxu1 (!%p285_p9), %v2807_v1  ;;  %v2680_v4 = vld [vmem:[%s3354_s3 + $0x1c] sm:$0xff] (!%p285_p9)   ;;  %v2681_v5 = vld [vmem:[%s3354_s3 + $0x10] ss:$0 sps:$4 sm:$0xff] (!%p285_p9)   ;;  %vm2808_vm1 = vmmov (!%p285_p9), 0   ;;  %vm395_vm2 = vcmask (!%p285_p9), 326656  }
   0xf   : > { %2396 = vmatpush3.bf16.msra.mxu0 (!%p285_p9), %v2677_v0  ;;  %2406 = vmatpush3.bf16.msra.mxu1 (!%p285_p9), %v2678_v2  ;;  %v2682_v6 = vld [vmem:[%s3354_s3 + $0x24] ss:$0 sps:$4 sm:$0xff] (!%p285_p9)   ;;  %v401_v7 = vsel (!%p285_p9), %vm399_vm0, %v2681_v5, 0  ;;  %v2684_v9 = vld [vmem:[%s3354_s3 + $0x28] sm:$0xff] (!%p285_p9)   ;;  %v2685_v11 = vld [vmem:[%s3354_s3 + $0x3c] sm:$0xff] (!%p285_p9)   ;;  %vm1343_vm3 = vcmask (!%p285_p9), 64512  }
  0x10   : > { %2397 = vmatprep.subr.bf16.mxu0 (!%p285_p9), %v2807_v1  ;;  %2407 = vmatprep.subr.bf16.mxu1 (!%p285_p9), %v2807_v1  ;;  %v459_v8 = vsel (!%p285_p9), %vm399_vm0, %v2682_v6, 0  ;;  %v2686_v12 = vld [vmem:[%s3354_s3 + $0x30] sm:$0xff] (!%p285_p9)   ;;  %v2687_v13 = vld [vmem:[%s3354_s3 + $0x44] sm:$0xff] (!%p285_p9)   ;;  %v2688_v14 = vld [vmem:[%s3354_s3 + $0x38] ss:$0 sps:$4 sm:$0xff] (!%p285_p9)   ;;  %vm1574_vm4 = vcmask (!%p285_p9), 130048  }
  0x11   : > { %2401 = vmatprep.mubr.msk.bf16.mxu0 (!%p285_p9), %vm2808_vm1, %v2807_v1  ;;  %2411 = vmatprep.mubr.msk.bf16.mxu1 (!%p285_p9), %vm2808_vm1, %v2807_v1  ;;  %v2689_v15 = vld [vmem:[%s3354_s3 + $0x4c] ss:$0 sps:$4 sm:$0xff] (!%p285_p9)   ;;  %v517_v16 = vsel (!%p285_p9), %vm399_vm0, %v2688_v14, 0  ;;  %v2690_v18 = vld [vmem:[%s3354_s3 + $0x50] sm:$0xff] (!%p285_p9)   ;;  %v2691_v19 = vld [vmem:[%s3355_s4] sm:$0xff] (!%p285_p9)   ;;  %s2292_s25 = sshll.u32 (!%p285_p9), %s2876_s9, 6 }
  0x12   : > { %v575_v17 = vsel (!%p285_p9), %vm399_vm0, %v2689_v15, 0  ;;  %v2692_v20 = vld [vmem:[%s3354_s3 + $0x58] sm:$0xff] (!%p285_p9)   ;;  %v2694_v21 = vld [vmem:[%s3354_s3 + $0x60] ss:$0 sps:$4 sm:$0xff] (!%p285_p9)   ;;  %v2695_v22 = vld [vmem:[%s3355_s4 + $0x10] ss:$0 sps:$4 sm:$0xff] (!%p285_p9)  }
  0x13   : > { %2398 = vmatpush3.bf16.msra.mxu0 (!%p285_p9), %v2679_v3  ;;  %2408 = vmatpush3.bf16.msra.mxu1 (!%p285_p9), %v2680_v4  ;;  %v2693_v23 = vld [vmem:[%s3355_s4 + $0x8] sm:$0xff] (!%p285_p9)   ;;  %v633_v24 = vsel (!%p285_p9), %vm399_vm0, %v2694_v21, 0  ;;  %v724_v25 = vsel (!%p285_p9), %vm399_vm0, %v2695_v22, 0  ;;  %v2696_v27 = vld [vmem:[%s3355_s4 + $0x14] sm:$0xff] (!%p285_p9)   ;;  %v2698_v29 = vld [vmem:[%s3355_s4 + $0x1c] sm:$0xff] (!%p285_p9)   ;;  %vm2107_vm5 = vcmask (!%p285_p9), 322560  }
  0x14   : > { %2399 = vmatprep.subr.bf16.mxu0 (!%p285_p9), %v2807_v1  ;;  %2409 = vmatprep.subr.bf16.mxu1 (!%p285_p9), %v2807_v1  ;;  %v2697_v28 = vld [vmem:[%s3355_s4 + $0x28] sm:$0xff] (!%p285_p9)   ;;  %v2699_v30 = vld [vmem:[%s3355_s4 + $0x30] sm:$0xff] (!%p285_p9)   ;;  %v2700_v31 = vld [vmem:[%s3355_s4 + $0x24] ss:$0 sps:$4 sm:$0xff] (!%p285_p9)  }
  0x15   : > { %s2931_s13 = scalar_select %p327_p10, %s2876_s9, 1  ;;  %v2701_v32 = vld [vmem:[%s3355_s4 + $0x38] ss:$0 sps:$4 sm:$0xff]   ;;  %v783_v33 = vsel %vm399_vm0, %v2700_v31, 0  ;;  %v2702_v35 = vld [vmem:[%s3355_s4 + $0x3c] sm:$0xff]   ;;  %v2703_v36 = vld [vmem:[%s3355_s4 + $0x50] sm:$0xff]  }
  0x16   : > { %v842_v34 = vsel %vm399_vm0, %v2701_v32, 0  ;;  %v2704_v37 = vld [vmem:[%s3355_s4 + $0x44] sm:$0xff]   ;;  %v2705_v38 = vld [vmem:[%s3355_s4 + $0x58] sm:$0xff]   ;;  %v2706_v39 = vld [vmem:[%s3355_s4 + $0x4c] ss:$0 sps:$4 sm:$0xff]   ;;  %s2809_s9 = smov [#allocation2]  }
  0x17   : > { %s2211_s17 = sshll.u32 %s2931_s13, 2  ;;  %s2295_s18 = sshll.u32 %s2931_s13, 3  ;;  %2400 = vmatpush3.bf16.msra.mxu0 %v401_v7  ;;  %2410 = vmatpush3.bf16.msra.mxu1 %v459_v8  ;;  %v2707_v40 = vld [vmem:[%s3355_s4 + $0x60] ss:$0 sps:$4 sm:$0xff]   ;;  %v901_v41 = vsel %vm399_vm0, %v2706_v39, 0  ;;  %v2709_v44 = vld [vmem:[%s3356_s5 + $0x14] sm:$0xff]  }
  0x18   : > { %s330_s21 = scalar_lea.vmem %s3351_s0, %s2211_s17  ;;  %s2945_s24 = scalar_lea.vmem %s3352_s1, %s2295_s18  ;;  %2415 = vmatprep.subr.bf16.mxu0 %v2807_v1  ;;  %2425 = vmatprep.subr.bf16.mxu1 %v2807_v1  ;;  %v960_v42 = vsel %vm399_vm0, %v2707_v40, 0  ;;  %v2708_v43 = vld [vmem:[%s3356_s5] sm:$0xff]   ;;  %v2710_v45 = vld [vmem:[%s3356_s5 + $0x8] sm:$0xff]   ;;  %v2712_v47 = vld [vmem:[%s3356_s5 + $0x10] ss:$0 sps:$4 sm:$0xff]  }
  0x19   : > { %v342_v10 = vld [vmem:[%s330_s21] sm:$0xf]  ;;  %v2713_v48 = vld [vmem:[%s3356_s5 + $0x24] ss:$0 sps:$4 sm:$0xff]   ;;  %v1044_v49 = vsel %vm399_vm0, %v2712_v47, 0  ;;  %v2714_v51 = vld [vmem:[%s3356_s5 + $0x28] sm:$0xff]   ;;  %s3309_s18 = scalar_lea.hbm %s3359_s8, %s2292_s25 }
  0x1a   : > { %2402 = vmatmul.mubr.msk.bf16.vlgmr.msra.gmra.mrb[0].mxu0 %vm395_vm2, %v342_v10  ;;  %2412 = vmatmul.mubr.msk.bf16.vlgmr.msra.gmra.mrb[0].mxu1 %vm395_vm2, %v342_v10  ;;  %v3011_v26 = vld [vmem:[%s2945_s24] sm:$0xff]   ;;  %v1103_v50 = vsel %vm399_vm0, %v2713_v48, 0  ;;  %v2716_v53 = vld [vmem:[%s3356_s5 + $0x30] sm:$0xff]   ;;  %v2718_v55 = vld [vmem:[%s3356_s5 + $0x38] ss:$0 sps:$4 sm:$0xff]   ;;  %s2635_s20 = smul.u32 20, %s2931_s13 }
  0x1b   : > { %2416 = vmatpush3.bf16.msra.mxu0 %v2684_v9  ;;  %2426 = vmatpush3.bf16.msra.mxu1 %v2685_v11  ;;  %v2711_v46 = vld [vmem:[%s3356_s5 + $0x1c] sm:$0xff]   ;;  %v2717_v54 = vld [vmem:[%s3356_s5 + $0x44] sm:$0xff]   ;;  %v2719_v56 = vld [vmem:[%s3356_s5 + $0x4c] ss:$0 sps:$4 sm:$0xff]   ;;  %v1162_v57 = vsel %vm399_vm0, %v2718_v55, 0 }
  0x1c   : > { %2417 = vmatprep.subr.bf16.mxu0 %v2807_v1  ;;  %2427 = vmatprep.subr.bf16.mxu1 %v2807_v1  ;;  %v2715_v52 = vld [vmem:[%s3356_s5 + $0x3c] sm:$0xff]   ;;  %v1221_v58 = vsel %vm399_vm0, %v2719_v56, 0  ;;  %v2720_v59 = vld [vmem:[%s3356_s5 + $0x50] sm:$0xff]   ;;  %s340_s23 = scalar_lea.vmem %s3353_s2, %s2635_s20  ;;  %s2747_s20 = sshll.u32 %s2809_s9, 4  ;;  %s2748_s20 = int_to_ptr.vmem [resolvable:$false] %s2747_s20 }
  0x1d   : > { %2421 = vmatprep.mubr.msk.bf16.mxu0 %vm2808_vm1, %v2807_v1  ;;  %2431 = vmatprep.mubr.msk.bf16.mxu1 %vm2808_vm1, %v2807_v1  ;;  %v2721_v60 = vld [vmem:[%s3356_s5 + $0x58] sm:$0xff]   ;;  %v2722_v61 = vld [vmem:[%s3356_s5 + $0x60] ss:$0 sps:$4 sm:$0xff]   ;;  %s2749_s21 = scalar_lea.vmem %s2748_s20, 128 }
  0x1e   : > { %v1280_v62 = vsel %vm399_vm0, %v2722_v61, 0 }
  0x1f   : > { %2418 = vmatpush3.bf16.msra.mxu0 %v2686_v12  ;;  %2428 = vmatpush3.bf16.msra.mxu1 %v2687_v13 }
  0x20   : > { %2419 = vmatprep.subr.bf16.mxu0 %v2807_v1  ;;  %2429 = vmatprep.subr.bf16.mxu1 %v2807_v1 }
  0x23   : > { %2420 = vmatpush3.bf16.msra.mxu0 %v517_v16  ;;  %2430 = vmatpush3.bf16.msra.mxu1 %v575_v17 }
  0x24   : > { %2435 = vmatprep.subr.bf16.mxu0 %v2807_v1  ;;  %2445 = vmatprep.subr.bf16.mxu1 %v2807_v1 }
  0x26   : > { %2422 = vmatmul.mubr.msk.bf16.vlgmr.msra.gmra.mrb[4].mxu0 %vm395_vm2, %v342_v10  ;;  %2432 = vmatmul.mubr.msk.bf16.vlgmr.msra.gmra.mrb[4].mxu1 %vm395_vm2, %v342_v10 }
  0x27   : > { %2436 = vmatpush3.bf16.msra.mxu0 %v2690_v18  ;;  %2446 = vmatpush3.bf16.msra.mxu1 %v2691_v19 }
  0x28   : > { %2437 = vmatprep.subr.bf16.mxu0 %v2807_v1  ;;  %2447 = vmatprep.subr.bf16.mxu1 %v2807_v1 }
  0x29   : > { %2441 = vmatprep.mubr.msk.bf16.mxu0 %vm2808_vm1, %v2807_v1  ;;  %2451 = vmatprep.mubr.msk.bf16.mxu1 %vm2808_vm1, %v2807_v1 }
  0x2b   : > { %2438 = vmatpush3.bf16.msra.mxu0 %v2692_v20  ;;  %2448 = vmatpush3.bf16.msra.mxu1 %v2693_v23 }
  0x2c   : > { %2439 = vmatprep.subr.bf16.mxu0 %v2807_v1  ;;  %2449 = vmatprep.subr.bf16.mxu1 %v2807_v1 }
  0x2f   : > { %2440 = vmatpush3.bf16.msra.mxu0 %v633_v24  ;;  %2450 = vmatpush3.bf16.msra.mxu1 %v724_v25 }
  0x30   : > { %2455 = vmatprep.subr.bf16.mxu0 %v2807_v1  ;;  %2465 = vmatprep.subr.bf16.mxu1 %v2807_v1 }
  0x32   : > { %2442 = vmatmul.mubr.msk.bf16.vlgmr.msra.gmra.mrb[8].mxu0 %vm395_vm2, %v342_v10  ;;  %2452 = vmatmul.mubr.msk.bf16.vlgmr.msra.gmra.mrb[8].mxu1 %vm395_vm2, %v3011_v26 }
  0x33   : > { %2456 = vmatpush3.bf16.msra.mxu0 %v2696_v27  ;;  %2466 = vmatpush3.bf16.msra.mxu1 %v2697_v28 }
  0x34   : > { %2457 = vmatprep.subr.bf16.mxu0 %v2807_v1  ;;  %2467 = vmatprep.subr.bf16.mxu1 %v2807_v1 }
  0x35   : > { %2461 = vmatprep.mubr.msk.bf16.mxu0 %vm2808_vm1, %v2807_v1  ;;  %2471 = vmatprep.mubr.msk.bf16.mxu1 %vm2808_vm1, %v2807_v1 }
  0x37   : > { %2458 = vmatpush3.bf16.msra.mxu0 %v2698_v29  ;;  %2468 = vmatpush3.bf16.msra.mxu1 %v2699_v30 }
  0x38   : > { %2459 = vmatprep.subr.bf16.mxu0 %v2807_v1  ;;  %2469 = vmatprep.subr.bf16.mxu1 %v2807_v1 }
  0x3b   : > { %2460 = vmatpush3.bf16.msra.mxu0 %v783_v33  ;;  %2470 = vmatpush3.bf16.msra.mxu1 %v842_v34 }
  0x3c   : > { %2475 = vmatprep.subr.bf16.mxu0 %v2807_v1  ;;  %2485 = vmatprep.subr.bf16.mxu1 %v2807_v1 }
  0x3e   : > { %2462 = vmatmul.mubr.msk.bf16.vlgmr.msra.gmra.mrb[12].mxu0 %vm395_vm2, %v3011_v26  ;;  %2472 = vmatmul.mubr.msk.bf16.vlgmr.msra.gmra.mrb[12].mxu1 %vm395_vm2, %v3011_v26 }
  0x3f   : > { %2476 = vmatpush3.bf16.msra.mxu0 %v2702_v35  ;;  %2486 = vmatpush3.bf16.msra.mxu1 %v2703_v36 }
  0x40   : > { %2477 = vmatprep.subr.bf16.mxu0 %v2807_v1  ;;  %2487 = vmatprep.subr.bf16.mxu1 %v2807_v1 }
  0x41   : > { %2481 = vmatprep.mubr.msk.bf16.mxu0 %vm2808_vm1, %v2807_v1  ;;  %2491 = vmatprep.mubr.msk.bf16.mxu1 %vm2808_vm1, %v2807_v1 }
  0x43   : > { %2478 = vmatpush3.bf16.msra.mxu0 %v2704_v37  ;;  %2488 = vmatpush3.bf16.msra.mxu1 %v2705_v38 }
  0x44   : > { %2479 = vmatprep.subr.bf16.mxu0 %v2807_v1  ;;  %2489 = vmatprep.subr.bf16.mxu1 %v2807_v1 }
  0x47   : > { %2480 = vmatpush3.bf16.msra.mxu0 %v901_v41  ;;  %2490 = vmatpush3.bf16.msra.mxu1 %v960_v42 }
  0x48   : > { %2495 = vmatprep.subr.bf16.mxu0 %v2807_v1  ;;  %2505 = vmatprep.subr.bf16.mxu1 %v2807_v1 }
  0x4a   : > { %2482 = vmatmul.mubr.msk.bf16.vlgmr.msra.gmra.mrb[16].mxu0 %vm395_vm2, %v3011_v26  ;;  %2492 = vmatmul.mubr.msk.bf16.vlgmr.msra.gmra.mrb[16].mxu1 %vm395_vm2, %v3011_v26 }
  0x4b   : > { %2501 = vmatprep.mubr.msk.bf16.mxu0 %vm2808_vm1, %v2807_v1  ;;  %2511 = vmatprep.mubr.msk.bf16.mxu1 %vm2808_vm1, %v2807_v1 }
  0x4c   : > { %2496 = vmatpush3.bf16.msra.mxu0 %v2708_v43  ;;  %2506 = vmatpush3.bf16.msra.mxu1 %v2709_v44 }
  0x4d   : > { %2497 = vmatprep.subr.bf16.mxu0 %v2807_v1  ;;  %2507 = vmatprep.subr.bf16.mxu1 %v2807_v1 }
  0x50   : > { %2498 = vmatpush3.bf16.msra.mxu0 %v2710_v45  ;;  %2508 = vmatpush3.bf16.msra.mxu1 %v2711_v46 }
  0x51   : > { %2499 = vmatprep.subr.bf16.mxu0 %v2807_v1  ;;  %2509 = vmatprep.subr.bf16.mxu1 %v2807_v1 }
  0x54   : > { %2500 = vmatpush3.bf16.msra.mxu0 %v1044_v49  ;;  %2510 = vmatpush3.bf16.msra.mxu1 %v1103_v50 }
  0x55   : > { %2515 = vmatprep.subr.bf16.mxu0 %v2807_v1  ;;  %2525 = vmatprep.subr.bf16.mxu1 %v2807_v1 }
  0x57   : > { %2502 = vmatmul.mubr.msk.bf16.vlgmr.msra.gmra.mrb[20].mxu0 %vm395_vm2, %v3011_v26  ;;  %2512 = vmatmul.mubr.msk.bf16.vlgmr.msra.gmra.mrb[20].mxu1 %vm395_vm2, %v3011_v26 }
  0x58   : > { %2516 = vmatpush3.bf16.msra.mxu0 %v2714_v51  ;;  %2526 = vmatpush3.bf16.msra.mxu1 %v2715_v52 }
  0x59   : > { %2517 = vmatprep.subr.bf16.mxu0 %v2807_v1  ;;  %2527 = vmatprep.subr.bf16.mxu1 %v2807_v1 }
  0x5a   : > { %2521 = vmatprep.mubr.msk.bf16.mxu0 %vm2808_vm1, %v2807_v1  ;;  %2531 = vmatprep.mubr.msk.bf16.mxu1 %vm2808_vm1, %v2807_v1 }
  0x5c   : > { %2518 = vmatpush3.bf16.msra.mxu0 %v2716_v53  ;;  %2528 = vmatpush3.bf16.msra.mxu1 %v2717_v54 }
  0x5d   : > { %2519 = vmatprep.subr.bf16.mxu0 %v2807_v1  ;;  %2529 = vmatprep.subr.bf16.mxu1 %v2807_v1 }
  0x60   : > { %2520 = vmatpush3.bf16.msra.mxu0 %v1162_v57  ;;  %2530 = vmatpush3.bf16.msra.mxu1 %v1221_v58 }
  0x61   : > { %2535 = vmatprep.subr.bf16.mxu0 %v2807_v1  ;;  %2545 = vmatprep.subr.bf16.mxu1 %v2807_v1 }
  0x63   : > { %2522 = vmatmul.mubr.msk.bf16.vlgmr.msra.gmra.mrb[24].mxu0 %vm395_vm2, %v3011_v26  ;;  %2532 = vmatmul.mubr.msk.bf16.vlgmr.msra.gmra.mrb[24].mxu1 %vm395_vm2, %v3011_v26 }
  0x64   : > { %2536 = vmatpush3.bf16.msra.mxu0 %v2720_v59  ;;  %2547 = vmatprep.mubr.msk.bf16.mxu1 %vm2808_vm1, %v2807_v1 }
  0x65   : > { %2537 = vmatprep.subr.bf16.mxu0 %v2807_v1  ;;  %2541 = vmatprep.mubr.msk.bf16.mxu0 %vm2808_vm1, %v2807_v1 }
  0x68   : > { %2538 = vmatpush3.bf16.msra.mxu0 %v2721_v60 }
  0x69   : > { %2539 = vmatprep.subr.bf16.mxu0 %v2807_v1 }
  0x6c   : > { %2540 = vmatpush3.bf16.msra.mxu0 %v1280_v62 }
  0x6d   : > { %2557 = vmatprep.subr.bf16.mxu0 %v2807_v1 }
  0x6f   : > { %2542 = vmatmul.mubr.msk.bf16.vlgmr.msra.gmra.mrb[28].mxu0 %vm395_vm2, %v3011_v26 }
  0x70   : > { %2559 = vmatprep.mubr.msk.bf16.mxu0 %vm2808_vm1, %v2807_v1 }
  0xed   : > { %v437_v63 = vpop.f32.mrb[0].mxu0  ;;  %v495_v0 = vpop.f32.mrb[0].mxu1 }
  0xee   : > { %v2403_v2 = vpop.f32.mrb[1].mxu0  ;;  %v2413_v3 = vpop.f32.mrb[1].mxu1  ;;  %v1323_v26 = vmul.f32 0.35355338, %v437_v63  ;;  %v1324_v40 = vmul.f32 0.35355338, %v495_v0 }
  0xef   : > { %v440_v4 = vpop.f32.mrb[2].mxu0  ;;  %v498_v5 = vpop.f32.mrb[2].mxu1 }
  0xf0   : > { %v2404_v6 = vpop.f32.mrb[3].mxu0  ;;  %v2414_v7 = vpop.f32.mrb[3].mxu1  ;;  %v1328_v27 = vpack.c.bf16 %v1323_v26, %v1323_v26  ;;  %v1329_v42 = vpack.c.bf16 %v1324_v40, %v1324_v40 }
  0xf9   : > { %v553_v8 = vpop.f32.mrb[4].mxu0  ;;  %v611_v9 = vpop.f32.mrb[4].mxu1 }
  0xfa   : > { %v2423_v10 = vpop.f32.mrb[5].mxu0  ;;  %v2433_v11 = vpop.f32.mrb[5].mxu1  ;;  %v1325_v41 = vmul.f32 0.35355338, %v553_v8  ;;  %v1326_v56 = vmul.f32 0.35355338, %v611_v9 }
  0xfb   : > { %v556_v12 = vpop.f32.mrb[6].mxu0  ;;  %v614_v13 = vpop.f32.mrb[6].mxu1 }
  0xfc   : > { %v2424_v14 = vpop.f32.mrb[7].mxu0  ;;  %v2434_v15 = vpop.f32.mrb[7].mxu1  ;;  %v1330_v43 = vpack.c.bf16 %v1325_v41, %v1325_v41  ;;  %v1331_v58 = vpack.c.bf16 %v1326_v56, %v1326_v56 }
 0x105   : > { %v669_v16 = vpop.f32.mrb[8].mxu0  ;;  %v760_v17 = vpop.f32.mrb[8].mxu1 }
 0x106   : > { %v2443_v18 = vpop.f32.mrb[9].mxu0  ;;  %v2453_v19 = vpop.f32.mrb[9].mxu1  ;;  %v1327_v57 = vmul.f32 0.35355338, %v669_v16 }
 0x107   : > { %v672_v20 = vpop.f32.mrb[10].mxu0  ;;  %v763_v21 = vpop.f32.mrb[10].mxu1 }
 0x108   : > { %v2444_v22 = vpop.f32.mrb[11].mxu0  ;;  %v1333_v23 = vpack.c.bf16 %v763_v21, %v760_v17  ;;  %v2454_v24 = vpop.f32.mrb[11].mxu1  ;;  %v1332_v59 = vpack.c.bf16 %v1327_v57, %v1327_v57 }
 0x109   : > { %v2297_v22 = vld [vmem:[%s340_s23] sm:$0xff]  }
 0x10a   : > { %v1348_v25 = vsel %vm1343_vm3, %v1333_v23, 0  ;;  %v2298_v23 = vunpack.c.l.bf16 %v2297_v22 }
 0x10b   : > { %2546 = vmatpush3.bf16.xpose.msra.mxu1 %v1348_v25 }
 0x10c   : > { %2551 = vmatprep.subr.bf16.mxu1 %v2807_v1 }
 0x111   : > { %v819_v28 = vpop.f32.mrb[12].mxu0  ;;  %v878_v29 = vpop.f32.mrb[12].mxu1 }
 0x112   : > { %v2463_v30 = vpop.f32.mrb[13].mxu0  ;;  %v2473_v31 = vpop.f32.mrb[13].mxu1  ;;  %2548 = vmatmul.mubr.msk.bf16.vlgmr.msra.gmra.mrb[28].mxu1 %vm1343_vm3, %v1328_v27 }
 0x113   : > { %v822_v32 = vpop.f32.mrb[14].mxu0  ;;  %v881_v34 = vpop.f32.mrb[14].mxu1  ;;  %2553 = vmatprep.mubr.msk.bf16.mxu1 %vm2808_vm1, %v2807_v1  ;;  %v2304_v30 = vld [vmem:[%s340_s23 + $0x8] sm:$0xff]   ;;  %v2299_v31 = vunpack.c.h.bf16 %v2297_v22 }
 0x114   : > { %v1334_v33 = vpack.c.bf16 %v822_v32, %v819_v28  ;;  %v2464_v35 = vpop.f32.mrb[15].mxu0  ;;  %v1335_v36 = vpack.c.bf16 %v881_v34, %v878_v29  ;;  %v2474_v37 = vpop.f32.mrb[15].mxu1  ;;  %v2302_v32 = vunpack.c.l.bf16 %v2304_v30 }
 0x116   : > { %v1394_v38 = vsel %vm1343_vm3, %v1334_v33, 0  ;;  %v1440_v39 = vsel %vm1343_vm3, %v1335_v36, 0 }
 0x117   : > { %2552 = vmatpush3.bf16.xpose.msra.mxu1 %v1394_v38  ;;  %2558 = vmatpush3.bf16.xpose.msra.mxu0 %v1440_v39 }
 0x118   : > { %2563 = vmatprep.subr.bf16.mxu1 %v2807_v1  ;;  %2569 = vmatprep.subr.bf16.mxu0 %v2807_v1 }
 0x11d   : > { %v937_v44 = vpop.f32.mrb[16].mxu0  ;;  %v996_v45 = vpop.f32.mrb[16].mxu1 }
 0x11e   : > { %v2483_v46 = vpop.f32.mrb[17].mxu0  ;;  %2554 = vmatmul.mubr.msk.bf16.vlgmr.msra.gmra.mrb[32].mxu1 %vm1343_vm3, %v1329_v42  ;;  %v2493_v47 = vpop.f32.mrb[17].mxu1  ;;  %2560 = vmatmul.mubr.msk.bf16.vlgmr.msra.gmra.mrb[32].mxu0 %vm1343_vm3, %v1330_v43 }
 0x11f   : > { %v940_v48 = vpop.f32.mrb[18].mxu0  ;;  %2565 = vmatprep.mubr.msk.bf16.mxu1 %vm2808_vm1, %v2807_v1  ;;  %v999_v50 = vpop.f32.mrb[18].mxu1  ;;  %2571 = vmatprep.mubr.msk.bf16.mxu0 %vm2808_vm1, %v2807_v1  ;;  %v2303_v46 = vunpack.c.h.bf16 %v2304_v30 }
 0x120   : > { %v1336_v49 = vpack.c.bf16 %v940_v48, %v937_v44  ;;  %v2484_v51 = vpop.f32.mrb[19].mxu0  ;;  %v1337_v52 = vpack.c.bf16 %v999_v50, %v996_v45  ;;  %v2494_v53 = vpop.f32.mrb[19].mxu1  ;;  %v349_v45 = vld [vmem:[%s340_s23 + $0x10] sm:$0xf]  ;;  %s324_s23 = sand.u32 1, %s2797_s28  }
 0x121   : > { %v354_v47 = vunpack.c.l.bf16 %v349_v45  ;;  %s2210_s13 = sshll.u32 %s324_s23, 2  ;;  %s2110_s24 = scalar_lea.sflag [#allocation3], %s324_s23 }
 0x122   : > { %v1486_v54 = vsel %vm1343_vm3, %v1336_v49, 0  ;;  %v1532_v55 = vsel %vm1343_vm3, %v1337_v52, 0  ;;  %s326_s26 = scalar_lea.vmem [#allocation2], %s2210_s13 }
 0x123   : > { %2564 = vmatpush3.bf16.xpose.msra.mxu1 %v1486_v54  ;;  %2570 = vmatpush3.bf16.xpose.msra.mxu0 %v1532_v55  ;;  %s2123_s10 = sshll.u32 %s326_s26, 4  ;;  %s3311_s10 = int_to_ptr.vmem [resolvable:$true] %s2123_s10 }
 0x124   : > { %2575 = vmatprep.subr.bf16.mxu1 %v2807_v1  ;;  %2581 = vmatprep.subr.bf16.mxu0 %v2807_v1  ;;  %s2743_s19 = scalar_lea.vmem %s3311_s10, 64  ;;  %p2750_p0 = scmp.lt.s32.totalorder %s3311_s10, %s2748_s20 }
 0x125   : > { %p2744_p11 = scmp.ne.s32.totalorder %s3311_s10, %s2743_s19  ;;  %p2751_p1 = scmp.lt.s32.totalorder %s2749_s21, %s2743_s19 }
 0x127   : > { %p2745_p12 = pnand %p2744_p11, %p2893_p5  ;;  %p2752_p2 = por %p2751_p1, %p2750_p0 }
 0x129   : > { %p2746_p13 = pneg %p2745_p12 }
 0x12a   : > { %2566 = vmatmul.mubr.msk.bf16.vlgmr.msra.gmra.mrb[36].mxu1 %vm1343_vm3, %v1331_v58  ;;  %2572 = vmatmul.mubr.msk.bf16.vlgmr.msra.gmra.mrb[36].mxu0 %vm1343_vm3, %v1332_v59  ;;  %v1080_v60 = vpop.f32.mrb[20].mxu0  ;;  %v1139_v61 = vpop.f32.mrb[20].mxu1 }
 0x12b   : > { %2577 = vmatprep.mubr.msk.bf16.mxu1 %vm2808_vm1, %v2807_v1  ;;  %2583 = vmatprep.mubr.msk.bf16.mxu0 %vm2808_vm1, %v2807_v1  ;;  %v2503_v62 = vpop.f32.mrb[21].mxu0  ;;  %v2513_v63 = vpop.f32.mrb[21].mxu1  ;;  %p2753_p3 = pnand %p2752_p2, %p2746_p13 }
 0x12c   : > { %v1083_v0 = vpop.f32.mrb[22].mxu0  ;;  %v1142_v2 = vpop.f32.mrb[22].mxu1 }
 0x12d   : > { %v1338_v3 = vpack.c.bf16 %v1083_v0, %v1080_v60  ;;  %v2504_v4 = vpop.f32.mrb[23].mxu0  ;;  %v1339_v5 = vpack.c.bf16 %v1142_v2, %v1139_v61  ;;  %v2514_v6 = vpop.f32.mrb[23].mxu1 }
 0x12f   : > { %2576 = vmatpush3.bf16.msra.mxu1 %v1338_v3  ;;  %2582 = vmatpush3.bf16.msra.mxu0 %v1339_v5 }
 0x130   : > { %2587 = vmatprep.subr.bf16.mxu1 %v2807_v1  ;;  %2593 = vmatprep.subr.bf16.mxu0 %v2807_v1 }
 0x136   : > { %v3203_v7 = vpop.f32.mrb[24].mxu0  ;;  %v3205_v8 = vpop.f32.mrb[24].mxu1 }
 0x137   : > { %v2523_v9 = vpop.f32.mrb[25].mxu0  ;;  %v2533_v10 = vpop.f32.mrb[25].mxu1 }
 0x138   : > { %v3207_v11 = vpop.f32.mrb[26].mxu0  ;;  %v3209_v12 = vpop.f32.mrb[26].mxu1 }
 0x139   : > { %v1340_v13 = vpack.c.bf16 %v3207_v11, %v3203_v7  ;;  %v2524_v14 = vpop.f32.mrb[27].mxu0  ;;  %v1341_v15 = vpack.c.bf16 %v3209_v12, %v3205_v8  ;;  %v2534_v16 = vpop.f32.mrb[27].mxu1 }
 0x142   : > { %v3215_v17 = vpop.f32.mrb[28].mxu0 }
 0x143   : > { %v2543_v18 = vpop.f32.mrb[29].mxu0 }
 0x144   : > { %v3217_v19 = vpop.f32.mrb[30].mxu0 }
 0x145   : > { %v1342_v20 = vpack.c.bf16 %v3217_v19, %v3215_v17  ;;  %v2544_v21 = vpop.f32.mrb[31].mxu0  ;;  %v1856_v19 = vld [vmem:[%s3357_s6 + $0x4] sm:$0xf] }
 0x1e5   : > { %v1384_v24 = vpop.f32.mrb[28].mxu1 }
 0x1e6   : > { %v1385_v25 = vadd.f32 %v2298_v23, %v1384_v24  ;;  %v2549_v26 = vpop.f32.mrb[29].mxu1 }
 0x1e7   : > { %v1387_v27 = vpop.f32.mrb[30].mxu1 }
 0x1e8   : > { %v2550_v28 = vpop.f32.mrb[31].mxu1  ;;  %v1575_v29 = vsel %vm1574_vm4, %v1385_v25, -inf }
 0x1e9   : > { %1576 = vmax.xlane.f32.xlu0 %v1575_v29 }
 0x1f1   : > { %v1430_v33 = vpop.f32.mrb[32].mxu1  ;;  %v1476_v35 = vpop.f32.mrb[32].mxu0 }
 0x1f2   : > { %v1431_v34 = vadd.f32 %v2299_v31, %v1430_v33  ;;  %v2555_v36 = vpop.f32.mrb[33].mxu1  ;;  %v1477_v37 = vadd.f32 %v2302_v32, %v1476_v35  ;;  %v2561_v38 = vpop.f32.mrb[33].mxu0 }
 0x1f3   : > { %v1433_v39 = vpop.f32.mrb[34].mxu1  ;;  %v1479_v40 = vpop.f32.mrb[34].mxu0 }
 0x1f4   : > { %v2556_v41 = vpop.f32.mrb[35].mxu1  ;;  %v1578_v42 = vsel %vm1574_vm4, %v1431_v34, -inf  ;;  %v2562_v43 = vpop.f32.mrb[35].mxu0  ;;  %v1581_v44 = vsel %vm1574_vm4, %v1477_v37, -inf }
 0x1f5   : > { %1579 = vmax.xlane.f32.xlu0 %v1578_v42  ;;  %1582 = vmax.xlane.f32.xlu1 %v1581_v44 }
 0x1fd   : > { %v1522_v48 = vpop.f32.mrb[36].mxu1  ;;  %v1568_v50 = vpop.f32.mrb[36].mxu0 }
 0x1fe   : > { %v1523_v49 = vadd.f32 %v2303_v46, %v1522_v48  ;;  %v2567_v51 = vpop.f32.mrb[37].mxu1  ;;  %v1569_v52 = vadd.f32 %v1568_v50, %v354_v47  ;;  %v2573_v53 = vpop.f32.mrb[37].mxu0  ;;  %v1857_v46 = vld [vmem:[%s3357_s6 + $0x8] sm:$0xf] }
 0x1ff   : > { %v1525_v54 = vpop.f32.mrb[38].mxu1  ;;  %v1571_v55 = vpop.f32.mrb[38].mxu0  ;;  %v1956_v50 = vsel %vm399_vm0, %v1857_v46, 0  ;;  %v1858_v53 = vld [vmem:[%s3357_s6 + $0xc] sm:$0xf] }
 0x200   : > { %v2568_v56 = vpop.f32.mrb[39].mxu1  ;;  %v1584_v57 = vsel %vm1574_vm4, %v1523_v49, -inf  ;;  %v2574_v58 = vpop.f32.mrb[39].mxu0  ;;  %v1587_v59 = vsel %vm1574_vm4, %v1569_v52, -inf  ;;  %v1859_v54 = vld [vmem:[%s3357_s6 + $0x10] sm:$0xf] }
 0x201   : > { %1585 = vmax.xlane.f32.xlu1 %v1584_v57  ;;  %1588 = vmax.xlane.f32.xlu0 %v1587_v59  ;;  %v2002_v59 = vsel %vm399_vm0, %v1858_v53, 0 }
 0x276   : > { %v1577_v60 = vpop.xlane.xlu0 %1576 }
 0x277   : > { %v1590_v61 = vsub.f32 %v1385_v25, %v1577_v60 }
 0x279   : > { %v1595_v62 = vmul.f32 1.442695, %v1590_v61 }
 0x27b   : > { %2723 = vpow2.f32 %v1595_v62 }
 0x282   : > { %v1580_v63 = vpop.xlane.xlu0 %1579  ;;  %v1583_v2 = vpop.xlane.xlu1 %1582 }
 0x283   : > { %v1591_v0 = vsub.f32 %v1431_v34, %v1580_v63  ;;  %v1592_v3 = vsub.f32 %v1477_v37, %v1583_v2  ;;  %v2048_v63 = vsel %vm399_vm0, %v1859_v54, 0 }
 0x285   : > { %v1597_v4 = vmul.f32 1.442695, %v1591_v0  ;;  %v2724_v5 = vpop.eup %2723  ;;  %v1599_v6 = vmul.f32 1.442695, %v1592_v3 }
 0x286   : > { %v1605_v9 = vsel %vm1574_vm4, %v2724_v5, 0.0 }
 0x287   : > { %2725 = vpow2.f32 %v1597_v4  ;;  %1606 = vadd.xlane.f32.xlu1 %v1605_v9 }
 0x288   : > { %2727 = vpow2.f32 %v1599_v6 }
 0x28e   : > { %v1586_v10 = vpop.xlane.xlu1 %1585  ;;  %v1589_v16 = vpop.xlane.xlu0 %1588 }
 0x28f   : > { %v1593_v14 = vsub.f32 %v1523_v49, %v1586_v10  ;;  %v1594_v18 = vsub.f32 %v1569_v52, %v1589_v16 }
 0x291   : > { %v2726_v21 = vpop.eup %2725  ;;  %v1601_v22 = vmul.f32 1.442695, %v1593_v14  ;;  %v1603_v24 = vmul.f32 1.442695, %v1594_v18 }
 0x292   : > { %v2728_v23 = vpop.eup %2727  ;;  %v1608_v25 = vsel %vm1574_vm4, %v2726_v21, 0.0 }
 0x293   : > { %2729 = vpow2.f32 %v1601_v22  ;;  %v1611_v26 = vsel %vm1574_vm4, %v2728_v23, 0.0  ;;  %1609 = vadd.xlane.f32.xlu0 %v1608_v25 }
 0x294   : > { %2731 = vpow2.f32 %v1603_v24  ;;  %1612 = vadd.xlane.f32.xlu1 %v1611_v26 }
 0x29d   : > { %v2730_v27 = vpop.eup %2729 }
 0x29e   : > { %v2732_v28 = vpop.eup %2731  ;;  %v1614_v29 = vsel %vm1574_vm4, %v2730_v27, 0.0 }
 0x29f   : > { %1615 = vadd.xlane.f32.xlu0 %v1614_v29  ;;  %v1617_v30 = vsel %vm1574_vm4, %v2732_v28, 0.0 }
 0x2a0   : > { %1618 = vadd.xlane.f32.xlu1 %v1617_v30 }
 0x314   : > { %v1607_v31 = vpop.xlane.xlu1 %1606 }
 0x315   : > { %2733 = vrcp.f32 %v1607_v31 }
 0x31f   : > { %v2734_v32 = vpop.eup %2733 }
 0x320   : > { %v1610_v33 = vpop.xlane.xlu0 %1609  ;;  %v1625_v34 = vmul.f32 %v2734_v32, %v2724_v5 }
 0x321   : > { %v1613_v35 = vpop.xlane.xlu1 %1612  ;;  %2735 = vrcp.f32 %v1610_v33 }
 0x322   : > { %2737 = vrcp.f32 %v1613_v35  ;;  %v1630_v36 = vpack.c.bf16 %v1625_v34, %v1625_v34  ;;  %v2101_v34 = vlaneseq }
 0x324   : > { %2578 = vmatmul.mubr.msk.bf16.vlgmr.msra.gmra.mrb[40].mxu1 %vm1574_vm4, %v1630_v36 }
 0x325   : > { %2588 = vmatpush3.bf16.msra.mxu1 %v1340_v13  ;;  %2589 = vmatprep.mubr.msk.bf16.mxu1 %vm2808_vm1, %v2807_v1 }
 0x326   : > { %2599 = vmatprep.subr.bf16.mxu1 %v2807_v1 }
 0x32b   : > { %v2736_v37 = vpop.eup %2735 }
 0x32c   : > { %v2738_v38 = vpop.eup %2737  ;;  %v1626_v39 = vmul.f32 %v2736_v37, %v2726_v21  ;;  %v1616_v40 = vpop.xlane.xlu0 %1615 }
 0x32d   : > { %v1627_v41 = vmul.f32 %v2738_v38, %v2728_v23  ;;  %v1619_v42 = vpop.xlane.xlu1 %1618  ;;  %2739 = vrcp.f32 %v1616_v40  ;;  %v2102_v40 = vshrl.u32 %v2101_v34, 7 }
 0x32e   : > { %2741 = vrcp.f32 %v1619_v42  ;;  %v1631_v43 = vpack.c.bf16 %v1626_v39, %v1626_v39 }
 0x32f   : > { %v1632_v44 = vpack.c.bf16 %v1627_v41, %v1627_v41  ;;  %v2099_v41 = vld [vmem:[%s3358_s7] sm:$0x1] }
 0x330   : > { %2584 = vmatmul.mubr.msk.bf16.vlgmr.msra.gmra.mrb[40].mxu0 %vm1574_vm4, %v1631_v43  ;;  %v2100_v42 = vunpack.c.l.bf16 %v2099_v41  ;;  %v2103_v43 = vsub.s32 0, %v2102_v40 }
 0x331   : > { %2590 = vmatmul.mubr.msk.bf16.vlgmr.msra.gmra.mrb[44].mxu1 %vm1574_vm4, %v1632_v44  ;;  %2594 = vmatpush3.bf16.msra.mxu0 %v1341_v15  ;;  %v1855_v15 = vld [vmem:[%s3357_s6] sm:$0xf] }
 0x332   : > { %2600 = vmatpush3.bf16.msra.mxu1 %v1342_v20  ;;  %2595 = vmatprep.mubr.msk.bf16.mxu0 %vm2808_vm1, %v2807_v1  ;;  %v1864_v17 = vsel %vm399_vm0, %v1855_v15, 0  ;;  %v1910_v20 = vsel %vm399_vm0, %v1856_v19, 0 }
 0x333   : > { %2601 = vmatprep.mubr.msk.bf16.mxu1 %vm2808_vm1, %v2807_v1  ;;  %2605 = vmatprep.subr.bf16.mxu0 %v2807_v1 }
 0x334   : > { %2611 = vmatprep.subr.bf16.mxu1 %v2807_v1 }
 0x337   : > { %v2740_v7 = vpop.eup %2739 }
 0x338   : > { %v2742_v11 = vpop.eup %2741  ;;  %v1628_v13 = vmul.f32 %v2740_v7, %v2730_v27 }
 0x339   : > { %v1629_v45 = vmul.f32 %v2742_v11, %v2732_v28 }
 0x33a   : > { %v1633_v8 = vpack.c.bf16 %v1628_v13, %v1628_v13 }
 0x33b   : > { %v1634_v12 = vpack.c.bf16 %v1629_v45, %v1629_v45 }
 0x33c   : > { %2596 = vmatmul.mubr.msk.bf16.vlgmr.msra.gmra.mrb[44].mxu0 %vm1574_vm4, %v1633_v8  ;;  %v2104_v8 = vrot.slane %v2100_v42, %v2103_v43 }
 0x33d   : > { %2602 = vmatmul.mubr.msk.bf16.vlgmr.msra.gmra.mrb[48].mxu1 %vm1574_vm4, %v1634_v12  ;;  %2607 = vmatprep.mubr.msk.bf16.mxu0 %vm2808_vm1, %v2807_v1 }
 0x33e   : > { %2613 = vmatprep.mubr.msk.bf16.mxu1 %vm2808_vm1, %v2807_v1  ;;  %2606 = vmatpush3.bf16.msra.mxu0 %v1864_v17 }
 0x33f   : > { %2617 = vmatprep.subr.bf16.mxu0 %v2807_v1  ;;  %2612 = vmatpush3.bf16.msra.mxu1 %v1910_v20 }
 0x340   : > { %2623 = vmatprep.subr.bf16.mxu1 %v2807_v1 }
 0x3f7   : > { %v1672_v47 = vpop.f32.mrb[40].mxu1 }
 0x3f8   : > { %v1850_v48 = vpack.c.bf16 %v1672_v47, %v1672_v47  ;;  %v2579_v49 = vpop.f32.mrb[41].mxu1 }
 0x3f9   : > { %v1675_v51 = vpop.f32.mrb[42].mxu1 }
 0x3fa   : > { %v2580_v52 = vpop.f32.mrb[43].mxu1  ;;  %2608 = vmatmul.mubr.msk.bf16.vlgmr.msra.gmra.mrb[48].mxu0 %vm1343_vm3, %v1850_v48 }
 0x3fb   : > { %2618 = vmatpush3.bf16.msra.mxu0 %v1956_v50  ;;  %2619 = vmatprep.mubr.msk.bf16.mxu0 %vm2808_vm1, %v2807_v1 }
 0x3fc   : > { %2629 = vmatprep.subr.bf16.mxu0 %v2807_v1 }
 0x403   : > { %v1715_v55 = vpop.f32.mrb[40].mxu0 }
 0x404   : > { %v1851_v56 = vpack.c.bf16 %v1715_v55, %v1715_v55  ;;  %v1758_v57 = vpop.f32.mrb[44].mxu1  ;;  %v2585_v58 = vpop.f32.mrb[41].mxu0 }
 0x405   : > { %v1852_v60 = vpack.c.bf16 %v1758_v57, %v1758_v57  ;;  %v2591_v61 = vpop.f32.mrb[45].mxu1  ;;  %v1718_v62 = vpop.f32.mrb[42].mxu0 }
 0x406   : > { %v1761_v0 = vpop.f32.mrb[46].mxu1  ;;  %v2586_v2 = vpop.f32.mrb[43].mxu0  ;;  %2614 = vmatmul.mubr.msk.bf16.vlgmr.msra.gmra.mrb[52].mxu1 %vm1343_vm3, %v1851_v56 }
 0x407   : > { %v2592_v3 = vpop.f32.mrb[47].mxu1  ;;  %2620 = vmatmul.mubr.msk.bf16.vlgmr.msra.gmra.mrb[52].mxu0 %vm1343_vm3, %v1852_v60  ;;  %2624 = vmatpush3.bf16.msra.mxu1 %v2002_v59 }
 0x408   : > { %2630 = vmatpush3.bf16.msra.mxu0 %v2048_v63  ;;  %2625 = vmatprep.mubr.msk.bf16.mxu1 %vm2808_vm1, %v2807_v1 }
 0x409   : > { %2631 = vmatprep.mubr.msk.bf16.mxu0 %vm2808_vm1, %v2807_v1 }
 0x40f   : > { %v1801_v4 = vpop.f32.mrb[44].mxu0 }
 0x410   : > { %v1853_v5 = vpack.c.bf16 %v1801_v4, %v1801_v4  ;;  %v1844_v6 = vpop.f32.mrb[48].mxu1  ;;  %v2597_v9 = vpop.f32.mrb[45].mxu0 }
 0x411   : > { %v1854_v10 = vpack.c.bf16 %v1844_v6, %v1844_v6  ;;  %v2603_v14 = vpop.f32.mrb[49].mxu1  ;;  %v1804_v16 = vpop.f32.mrb[46].mxu0 }
 0x412   : > { %v1847_v18 = vpop.f32.mrb[50].mxu1  ;;  %v2598_v21 = vpop.f32.mrb[47].mxu0  ;;  %2626 = vmatmul.mubr.msk.bf16.vlgmr.msra.gmra.mrb[56].mxu1 %vm1343_vm3, %v1853_v5 }
 0x413   : > { %v2604_v22 = vpop.f32.mrb[51].mxu1  ;;  %2632 = vmatmul.mubr.msk.bf16.vlgmr.msra.gmra.mrb[56].mxu0 %vm1343_vm3, %v1854_v10 }
 0x4cd   : > { %v1900_v23 = vpop.f32.mrb[48].mxu0 }
 0x4ce   : > { %v2609_v24 = vpop.f32.mrb[49].mxu0  ;;  %v2090_v1 = vsel %vm395_vm2, %v1900_v23, 0.0 }
 0x4cf   : > { %v1903_v25 = vpop.f32.mrb[50].mxu0 }
 0x4d0   : > { %v2610_v26 = vpop.f32.mrb[51].mxu0 }
 0x4d9   : > { %v1946_v27 = vpop.f32.mrb[52].mxu1 }
 0x4da   : > { %v2091_v28 = vsel %vm395_vm2, %v1946_v27, 0.0  ;;  %v1992_v29 = vpop.f32.mrb[52].mxu0  ;;  %v2615_v30 = vpop.f32.mrb[53].mxu1 }
 0x4db   : > { %v2092_v31 = vadd.f32 %v2091_v28, %v2090_v1  ;;  %v2621_v32 = vpop.f32.mrb[53].mxu0  ;;  %v1949_v33 = vpop.f32.mrb[54].mxu1  ;;  %v2093_v35 = vsel %vm395_vm2, %v1992_v29, 0.0 }
 0x4dc   : > { %v1995_v36 = vpop.f32.mrb[54].mxu0  ;;  %v2616_v37 = vpop.f32.mrb[55].mxu1 }
 0x4dd   : > { %v2094_v38 = vadd.f32 %v2093_v35, %v2092_v31  ;;  %v2622_v39 = vpop.f32.mrb[55].mxu0 }
 0x4e5   : > { %v2038_v44 = vpop.f32.mrb[56].mxu1 }
 0x4e6   : > { %v2095_v7 = vsel %vm395_vm2, %v2038_v44, 0.0  ;;  %v2084_v11 = vpop.f32.mrb[56].mxu0  ;;  %v2627_v13 = vpop.f32.mrb[57].mxu1 }
 0x4e7   : > { %v2096_v45 = vadd.f32 %v2095_v7, %v2094_v38  ;;  %v2633_v12 = vpop.f32.mrb[57].mxu0  ;;  %v2041_v15 = vpop.f32.mrb[58].mxu1  ;;  %v2097_v17 = vsel %vm395_vm2, %v2084_v11, 0.0 }
 0x4e8   : > { %v2087_v19 = vpop.f32.mrb[58].mxu0  ;;  %v2628_v20 = vpop.f32.mrb[59].mxu1 }
 0x4e9   : > { %v2098_v46 = vadd.f32 %v2097_v17, %v2096_v45  ;;  %v2634_v47 = vpop.f32.mrb[59].mxu0 }
 0x4eb   : > { %v2105_v48 = vadd.f32 %v2104_v8, %v2098_v46 }
 0x4ed   : > { %v2106_v49 = vpack.c.bf16 %v2105_v48, %v2105_v48 }
 0x4ef   : > { %2108 = vst.msk [vmem:[%s326_s26] sm:$0xf] %vm2107_vm5, %v2106_v49 }
 0x4f0   : > { %2756 = shalt.err (!%p2753_p3)
}
 0x4f1   : > { %s2757_s22 = scalar_lea.hbm %s3309_s18, 64  ;;  %s2761_s25 = scalar_lea.hbm %s3359_s8, 128 }
 0x4f2   : > { %p2758_p4 = scmp.ne.s32.totalorder %s3309_s18, %s2757_s22  ;;  %p2762_p9 = scmp.lt.u32.totalorder %s3309_s18, %s3359_s8 }
 0x4f3   : > { %p2763_p10 = scmp.lt.u32.totalorder %s2761_s25, %s2757_s22  ;;  %p2765_p12 = scmp.lt.u32.totalorder %s2757_s22, %s3309_s18 }
 0x4f4   : > { %p2759_p7 = pnand %p2758_p4, %p2893_p5 }
 0x4f5   : > { %p2764_p11 = por %p2763_p10, %p2762_p9 }
 0x4f6   : > { %p2760_p8 = pneg %p2759_p7 }
 0x4f7   : > { %p2766_p13 = por %p2765_p12, %p2764_p11 }
 0x4f9   : > { %p2767_p0 = pnand %p2766_p13, %p2760_p8 }
 0x4fb   : > { %2770 = shalt.err (!%p2767_p0)
}
 0x4fc   : > { %2636 = dma.vmem_to_hbm [thread:$0]  (%p2893_p5), %s3311_s10, 64, %s3309_s18, %s2110_s24  }
 0x4fd PF: > { %p2642_p1 = scmp.ge.s32.totalorder %s2805_s30, 2  ;;  %s2135_s17 = sand.u32 1, %s2793_s27  }
 0x4fe   : > { %s2136_s19 = scalar_lea.sflag [#allocation3], %s2135_s17 }
 0x4ff   : > { %p2639_p2 = pnand %p2642_p1, %p2897_p6 }
 0x501   : > { %2788 = dma.done.wait (!%p2639_p2), %s2136_s19, 64  }
 0x502   : > { %2790 = vsyncadd (!%p2639_p2), %s2136_s19, 4294967232  ;;  %p18_p3 = scmp.ge.s32.totalorder %s2880_s11, 4   ;;  %s3362_s27 = smov %s2797_s28 }
 0x503   : > { %s3363_s28 = smov %s2801_s29  ;;  %s3364_s29 = smov %s2891_s14 }
 0x504   : > { %s3365_s30 = smov %s2880_s11  ;;  %20 = sbr.rel (!%p18_p3) target bundleno = 3 (0x3), region = 93 }
 0x50b   :  { %2141 = vsyncpa [#allocation3], 1 }
 0x50c   :  { %2143 = vsyncpa [#allocation3 + $0x1], 1 }

</bundles_post_ra>
